<compile_context>
chip_gen: v6e
topology: v6e:2x2x1
jax: 0.10.0
libtpu: 0.0.40
codegen_flags: <defaults>
</compile_context>

<pallas_src>
import numpy as np
import jax
import jax.numpy as jnp
from jax.experimental import pallas as pl
from jax.experimental.pallas import tpu as pltpu


def _cdiv(a, b):
    return -(-a // b)


def make_encoder_kernel(num_features, group, k_pad):
    F, G = num_features, group

    def encoder_kernel(idx_ref, w_ref, o_ref):
        # idx_ref: (tnr, G*F) int32  -- indices already offset by f*d_pad per column
        # w_ref  : (G*k_pad, G*E) f32 -- block-diagonal fused embedding tables
        # o_ref  : (tnr, G*E) f32     -- lane-dense output (G atom rows per 128-lane row)
        idx = idx_ref[...]
        tnr = idx.shape[0]
        lane = jax.lax.broadcasted_iota(jnp.int32, (tnr, k_pad), 1)

        blocks = []
        for j in range(G):                               # G, F small & static -> unrolled
            base = j * F
            hit = lane == idx[:, base:base + 1]
            for f in range(1, F):
                hit = jnp.logical_or(hit, lane == idx[:, base + f:base + f + 1])
            blocks.append(hit.astype(jnp.float32))       # one cast per 128-lane block
        onehot = blocks[0] if G == 1 else jnp.concatenate(blocks, axis=1)

        # Single fused MXU matmul -> lane-dense output tile.
        o_ref[...] = jnp.dot(onehot, w_ref[...], preferred_element_type=jnp.float32)

    return encoder_kernel


def _pick_tn(n_rows, group, tn_max=4096, min_grid_steps=2):
    """Atom rows per grid step: multiple of 8*group, aims for >=2 'parallel' grid steps
    (v7x has 2 TensorCores) while staying <= tn_max and not over-padding tiny N."""
    unit = 8 * group
    n_units = _cdiv(n_rows, unit)
    max_units = max(1, tn_max // unit)
    steps = min(n_units, max(min_grid_steps, _cdiv(n_units, max_units)))
    return _cdiv(n_units, steps) * unit


def encoder_forward(x_idx, w_packed, *, emb_dim, d_pad, k_pad, group, tn=None):
    """x_idx: (N, F) int, w_packed: (G*k_pad, G*E) f32 -> (N, E) f32."""
    N, F = x_idx.shape
    G = group
    if tn is None:
        tn = _pick_tn(N, G)
    assert tn % G == 0 and (tn // G) % 8 == 0, "tn // G must be a multiple of 8"
    tnr = tn // G

    # Pad N so the grid tiles evenly (padded rows are sliced off below).
    n_pad = _cdiv(N, tn) * tn
    x_p = jnp.pad(x_idx.astype(jnp.int32), ((0, n_pad - N), (0, 0)))

    # Pack G consecutive atom rows into one dense index row (free row-major reshape) and
    # fold the constant per-feature offset f*d_pad into the indices here (fused by XLA).
    col_off = jnp.asarray((np.arange(G * F) % F) * d_pad, jnp.int32)[None, :]
    x_dense = x_p.reshape(n_pad // G, G * F) + col_off

    kernel = make_encoder_kernel(F, G, k_pad)
    out_dense = pl.pallas_call(
        kernel,
        out_shape=jax.ShapeDtypeStruct((n_pad // G, G * emb_dim), jnp.float32),
        grid=(n_pad // tn,),
        in_specs=[
            pl.BlockSpec((tnr, G * F), lambda i: (i, 0)),               # index tile
            pl.BlockSpec((G * k_pad, G * emb_dim), lambda i: (0, 0)),   # resident table
        ],
        out_specs=pl.BlockSpec((tnr, G * emb_dim), lambda i: (i, 0)),
        compiler_params=pltpu.CompilerParams(
            dimension_semantics=("parallel",),    # lets v7x shard row tiles across 2 TCs
            vmem_limit_bytes=32 * 1024 * 1024,
        ),
    )(x_dense, w_packed)

    # (n_pad/G, G*E) row-major is bit-identical to (n_pad, E) row-major.
    return out_dense.reshape(n_pad, emb_dim)[:N]


def make_tables(feature_dims, emb_dim, key):
    """Deterministic xavier-uniform embedding tables (one per categorical feature)."""
    tables = []
    for k, dim in zip(jax.random.split(key, len(feature_dims)), feature_dims):
        bound = (6.0 / (dim + emb_dim)) ** 0.5
        tables.append(jax.random.uniform(k, (dim, emb_dim), jnp.float32, -bound, bound))
    return tables


def pack_tables(tables, emb_dim, group):
    """Stack per-feature tables into the fused, block-diagonal (G*k_pad, G*E) layout."""
    F = len(tables)
    d_max = max(int(t.shape[0]) for t in tables)
    d_pad = ((d_max + 7) // 8) * 8                    # per-feature row stride
    k_pad = ((F * d_pad + 127) // 128) * 128          # fused contraction width (>=128)

    w_fused = jnp.zeros((k_pad, emb_dim), jnp.float32)
    for f, t in enumerate(tables):
        w_fused = w_fused.at[f * d_pad: f * d_pad + t.shape[0], :].set(t)

    G = group
    w_packed = jnp.zeros((G * k_pad, G * emb_dim), jnp.float32)
    for j in range(G):
        w_packed = w_packed.at[j * k_pad:(j + 1) * k_pad,
                               j * emb_dim:(j + 1) * emb_dim].set(w_fused)
    return w_packed, d_pad, k_pad


if __name__ == "__main__":
    feature_dims = (5, 7, 3, 6)   # per-feature vocabulary sizes
    emb_dim = 32

    key = jax.random.PRNGKey(0)
    k_w, k_x = jax.random.split(key)

    tables = make_tables(feature_dims, emb_dim, k_w)

    # Lane-packing factor: how many emb_dim-wide rows fit in one 128-lane vreg row.
    group = 128 // emb_dim if (emb_dim <= 128 and 128 % emb_dim == 0) else 1
    w_packed, d_pad, k_pad = pack_tables(tables, emb_dim, group)

    def run_and_check(N, kx):
        cols = [jax.random.randint(kk, (N, 1), 0, dim, jnp.int32)
                for kk, dim in zip(jax.random.split(kx, len(feature_dims)), feature_dims)]
        x_idx = jnp.concatenate(cols, axis=1)             # (N, F) int32

        out = jax.block_until_ready(
            encoder_forward(x_idx, w_packed, emb_dim=emb_dim, d_pad=d_pad,
                            k_pad=k_pad, group=group))

        # Pure-JAX reference: sum of per-feature embedding lookups.
        ref = jnp.zeros((N, emb_dim), jnp.float32)
        for f in range(len(feature_dims)):
            ref = ref + jnp.take(tables[f], x_idx[:, f], axis=0)

        assert out.shape == (N, emb_dim)
        assert jnp.allclose(out, ref, atol=1e-5, rtol=1e-5)

    run_and_check(16, k_x)                          # tiny-N path: tn clamps to 32, 1 step
    run_and_check(300, jax.random.fold_in(k_x, 1))  # multi-step path: 2 "parallel" steps
    print("KERNEL_OK")
</pallas_src>

<mosaic_0001>
module attributes {stable_mosaic.version = 11 : i64} {
  func.func @encoder_kernel(%arg0: i32, %arg1: memref<8x16xi32, #tpu.memory_space<vmem>>, %arg2: memref<512x128xf32, #tpu.memory_space<vmem>>, %arg3: memref<8x128xf32, #tpu.memory_space<vmem>>) attributes {dimension_semantics = [#tpu.dimension_semantics<parallel>], iteration_bounds = array<i64: 1>, scalar_prefetch = 0 : i64, scratch_operands = 0 : i64, tpu.core_type = #tpu.core_type<tc>, window_params = [{transform_indices = @transform_0, window_bounds = array<i64: 8, 16>}, {pipeline_mode = #tpu.pipeline_mode<synchronous>, transform_indices = @transform_1, window_bounds = array<i64: 512, 128>}, {transform_indices = @transform_2, window_bounds = array<i64: 8, 128>}]} {
    %c0 = arith.constant 0 : index
    %c0_0 = arith.constant 0 : index
    %0 = vector.load %arg1[%c0, %c0_0] : memref<8x16xi32, #tpu.memory_space<vmem>>, vector<8x16xi32>
    %1 = tpu.iota {dimensions = array<i32: 1>} : vector<8x128xi32>
    %2 = vector.extract_strided_slice %0 {offsets = [0, 0], sizes = [8, 1], strides = [1, 1]} : vector<8x16xi32> to vector<8x1xi32>
    %3 = vector.broadcast %2 : vector<8x1xi32> to vector<8x128xi32>
    %4 = arith.cmpi eq, %1, %3 : vector<8x128xi32>
    %5 = vector.extract_strided_slice %0 {offsets = [0, 1], sizes = [8, 1], strides = [1, 1]} : vector<8x16xi32> to vector<8x1xi32>
    %6 = vector.broadcast %5 : vector<8x1xi32> to vector<8x128xi32>
    %7 = arith.cmpi eq, %1, %6 : vector<8x128xi32>
    %8 = arith.ori %4, %7 : vector<8x128xi1>
    %9 = vector.extract_strided_slice %0 {offsets = [0, 2], sizes = [8, 1], strides = [1, 1]} : vector<8x16xi32> to vector<8x1xi32>
    %10 = vector.broadcast %9 : vector<8x1xi32> to vector<8x128xi32>
    %11 = arith.cmpi eq, %1, %10 : vector<8x128xi32>
    %12 = arith.ori %8, %11 : vector<8x128xi1>
    %13 = vector.extract_strided_slice %0 {offsets = [0, 3], sizes = [8, 1], strides = [1, 1]} : vector<8x16xi32> to vector<8x1xi32>
    %14 = vector.broadcast %13 : vector<8x1xi32> to vector<8x128xi32>
    %15 = arith.cmpi eq, %1, %14 : vector<8x128xi32>
    %16 = arith.ori %12, %15 : vector<8x128xi1>
    %17 = arith.extui %16 : vector<8x128xi1> to vector<8x128xi32>
    %18 = arith.sitofp %17 : vector<8x128xi32> to vector<8x128xf32>
    %19 = vector.extract_strided_slice %0 {offsets = [0, 4], sizes = [8, 1], strides = [1, 1]} : vector<8x16xi32> to vector<8x1xi32>
    %20 = vector.broadcast %19 : vector<8x1xi32> to vector<8x128xi32>
    %21 = arith.cmpi eq, %1, %20 : vector<8x128xi32>
    %22 = vector.extract_strided_slice %0 {offsets = [0, 5], sizes = [8, 1], strides = [1, 1]} : vector<8x16xi32> to vector<8x1xi32>
    %23 = vector.broadcast %22 : vector<8x1xi32> to vector<8x128xi32>
    %24 = arith.cmpi eq, %1, %23 : vector<8x128xi32>
    %25 = arith.ori %21, %24 : vector<8x128xi1>
    %26 = vector.extract_strided_slice %0 {offsets = [0, 6], sizes = [8, 1], strides = [1, 1]} : vector<8x16xi32> to vector<8x1xi32>
    %27 = vector.broadcast %26 : vector<8x1xi32> to vector<8x128xi32>
    %28 = arith.cmpi eq, %1, %27 : vector<8x128xi32>
    %29 = arith.ori %25, %28 : vector<8x128xi1>
    %30 = vector.extract_strided_slice %0 {offsets = [0, 7], sizes = [8, 1], strides = [1, 1]} : vector<8x16xi32> to vector<8x1xi32>
    %31 = vector.broadcast %30 : vector<8x1xi32> to vector<8x128xi32>
    %32 = arith.cmpi eq, %1, %31 : vector<8x128xi32>
    %33 = arith.ori %29, %32 : vector<8x128xi1>
    %34 = arith.extui %33 : vector<8x128xi1> to vector<8x128xi32>
    %35 = arith.sitofp %34 : vector<8x128xi32> to vector<8x128xf32>
    %36 = vector.extract_strided_slice %0 {offsets = [0, 8], sizes = [8, 1], strides = [1, 1]} : vector<8x16xi32> to vector<8x1xi32>
    %37 = vector.broadcast %36 : vector<8x1xi32> to vector<8x128xi32>
    %38 = arith.cmpi eq, %1, %37 : vector<8x128xi32>
    %39 = vector.extract_strided_slice %0 {offsets = [0, 9], sizes = [8, 1], strides = [1, 1]} : vector<8x16xi32> to vector<8x1xi32>
    %40 = vector.broadcast %39 : vector<8x1xi32> to vector<8x128xi32>
    %41 = arith.cmpi eq, %1, %40 : vector<8x128xi32>
    %42 = arith.ori %38, %41 : vector<8x128xi1>
    %43 = vector.extract_strided_slice %0 {offsets = [0, 10], sizes = [8, 1], strides = [1, 1]} : vector<8x16xi32> to vector<8x1xi32>
    %44 = vector.broadcast %43 : vector<8x1xi32> to vector<8x128xi32>
    %45 = arith.cmpi eq, %1, %44 : vector<8x128xi32>
    %46 = arith.ori %42, %45 : vector<8x128xi1>
    %47 = vector.extract_strided_slice %0 {offsets = [0, 11], sizes = [8, 1], strides = [1, 1]} : vector<8x16xi32> to vector<8x1xi32>
    %48 = vector.broadcast %47 : vector<8x1xi32> to vector<8x128xi32>
    %49 = arith.cmpi eq, %1, %48 : vector<8x128xi32>
    %50 = arith.ori %46, %49 : vector<8x128xi1>
    %51 = arith.extui %50 : vector<8x128xi1> to vector<8x128xi32>
    %52 = arith.sitofp %51 : vector<8x128xi32> to vector<8x128xf32>
    %53 = vector.extract_strided_slice %0 {offsets = [0, 12], sizes = [8, 1], strides = [1, 1]} : vector<8x16xi32> to vector<8x1xi32>
    %54 = vector.broadcast %53 : vector<8x1xi32> to vector<8x128xi32>
    %55 = arith.cmpi eq, %1, %54 : vector<8x128xi32>
    %56 = vector.extract_strided_slice %0 {offsets = [0, 13], sizes = [8, 1], strides = [1, 1]} : vector<8x16xi32> to vector<8x1xi32>
    %57 = vector.broadcast %56 : vector<8x1xi32> to vector<8x128xi32>
    %58 = arith.cmpi eq, %1, %57 : vector<8x128xi32>
    %59 = arith.ori %55, %58 : vector<8x128xi1>
    %60 = vector.extract_strided_slice %0 {offsets = [0, 14], sizes = [8, 1], strides = [1, 1]} : vector<8x16xi32> to vector<8x1xi32>
    %61 = vector.broadcast %60 : vector<8x1xi32> to vector<8x128xi32>
    %62 = arith.cmpi eq, %1, %61 : vector<8x128xi32>
    %63 = arith.ori %59, %62 : vector<8x128xi1>
    %64 = vector.extract_strided_slice %0 {offsets = [0, 15], sizes = [8, 1], strides = [1, 1]} : vector<8x16xi32> to vector<8x1xi32>
    %65 = vector.broadcast %64 : vector<8x1xi32> to vector<8x128xi32>
    %66 = arith.cmpi eq, %1, %65 : vector<8x128xi32>
    %67 = arith.ori %63, %66 : vector<8x128xi1>
    %68 = arith.extui %67 : vector<8x128xi1> to vector<8x128xi32>
    %69 = arith.sitofp %68 : vector<8x128xi32> to vector<8x128xf32>
    %70 = tpu.concatenate %18, %35, %52, %69 in 1 : vector<8x128xf32>, vector<8x128xf32>, vector<8x128xf32>, vector<8x128xf32> -> vector<8x512xf32>
    %c0_1 = arith.constant 0 : index
    %c0_2 = arith.constant 0 : index
    %71 = vector.load %arg2[%c0_1, %c0_2] : memref<512x128xf32, #tpu.memory_space<vmem>>, vector<512x128xf32>
    %cst = arith.constant dense<0.000000e+00> : vector<8x128xf32>
    %72 = tpu.matmul %70, %71, %cst {dimension_numbers = #tpu.dot_dimension_numbers<[1], [0], [0], [1], [0, 0, 1, 1], [], []>} : vector<8x512xf32>, vector<512x128xf32>, vector<8x128xf32> -> vector<8x128xf32>
    %c0_3 = arith.constant 0 : index
    %c0_4 = arith.constant 0 : index
    %73 = vector.load %arg3[%c0_3, %c0_4] : memref<8x128xf32, #tpu.memory_space<vmem>>, vector<8x128xf32>
    tpu.vector_store %arg3[%c0_3, %c0_4], %72 {strides = array<i32>} : memref<8x128xf32, #tpu.memory_space<vmem>>, vector<8x128xf32>,
    return
  }
  func.func @transform_0(%arg0: i32) -> (i32, i32) {
    %c0_i32 = arith.constant 0 : i32
    %c0_i32_0 = arith.constant 0 : i32
    return %arg0, %c0_i32 : i32, i32
  }
  func.func @transform_1(%arg0: i32) -> (i32, i32) {
    %c0_i32 = arith.constant 0 : i32
    %c0_i32_0 = arith.constant 0 : i32
    %c0_i32_1 = arith.constant 0 : i32
    return %c0_i32, %c0_i32_0 : i32, i32
  }
  func.func @transform_2(%arg0: i32) -> (i32, i32) {
    %c0_i32 = arith.constant 0 : i32
    %c0_i32_0 = arith.constant 0 : i32
    return %arg0, %c0_i32 : i32, i32
  }
}

</mosaic_0001>

<bundles_post_ra>
// kernel: tpu_custom_call.1
= control target key start
LH: loop header
LB: loop body
LE: loop exit
PB: predicated region body
PF: predicated region fallthrough
CT: control target
= control target key end

     0   :  { %7 = vsyncpa [#allocation3], 0  ;;  %s593_s0 = inlined_call_operand.hbm [shape: s32[8,16], index: 0, kind: input, shape index: {}]   ;;  %s594_s1 = inlined_call_operand.hbm [shape: f32[512,128], index: 1, kind: input, shape index: {}]   ;;  %s595_s2 = inlined_call_operand.hbm [shape: f32[8,128], index: 2, kind: output, shape index: {}]  }
   0x1   :  { %8 = vsyncpa [#allocation6], 0 }
   0x2   :  { %9 = vsyncpa [#allocation4], 0  ;;  %s529_s9 = smov [#allocation2]   ;;  %s530_s11 = smov [#allocation5]  }
   0x3   :  { %s16_s10 = sshll.u32 %s529_s9, 4  ;;  %s25_s12 = sshll.u32 %s530_s11, 4  ;;  %s17_s10 = int_to_ptr.vmem [resolvable:$true] %s16_s10  ;;  %s26_s12 = int_to_ptr.vmem [resolvable:$true] %s25_s12 }
   0x4   :  { %s471_s13 = scalar_lea.vmem %s17_s10, 128  ;;  %p476_p1 = scmp.lt.s32.totalorder %s17_s10, %s17_s10 }
   0x5   :  { %p472_p0 = scmp.ne.s32.totalorder %s17_s10, %s471_s13  ;;  %p477_p2 = scmp.lt.s32.totalorder %s471_s13, %s471_s13 }
   0x7   :  { %p478_p3 = por %p477_p2, %p476_p1 }
   0x9   :  { %p479_p4 = pnand %p478_p3, %p472_p0 }
   0xb   :  { %482 = shalt.err (!%p479_p4)
}
   0xc   :  { %19 = dma.hbm_to_vmem [thread:$0]  %s593_s0, 128, %s17_s10, [#allocation3]  }
   0xd   :  { %s491_s16 = scalar_lea.vmem %s26_s12, 8192  ;;  %p496_p6 = scmp.lt.s32.totalorder %s26_s12, %s26_s12 }
   0xe   :  { %p492_p5 = scmp.ne.s32.totalorder %s26_s12, %s491_s16  ;;  %p497_p7 = scmp.lt.s32.totalorder %s491_s16, %s491_s16 }
  0x10   :  { %p498_p8 = por %p497_p7, %p496_p6 }
  0x12   :  { %p499_p9 = pnand %p498_p8, %p492_p5 }
  0x14   :  { %502 = shalt.err (!%p499_p9)
}
  0x15   :  { %s531_s17 = smov 128   ;;  %s532_s18 = smov 8  }
  0x16   :  { %31 = dma.hbm_to_vmem [thread:$0]  %s594_s1, 8192, %s26_s12, [#allocation6], %s531_s17, %s531_s17, %s532_s18  }
  0x17   :  { %523 = dma.done.wait [#allocation3], 128  }
  0x18   :  { %524 = vsyncadd [#allocation3], 4294967168 }
  0x19   :  { %525 = dma.done.wait [#allocation6], 8192  }
  0x1a   :  { %526 = vsyncadd [#allocation6], 4294959104  ;;  %v533_v0 = vmov 12   ;;  %v534_v1 = vmov 4   ;;  %v572_v2 = vld [vmem:[#allocation2] sm:$0xff]  ;;  %v155_v5 = vld [vmem:[#allocation5 + $0xf0] sm:$0xff] }
  0x1b   :  { %448 = vset.pattern.permute.xlu1 %v533_v0  ;;  %446 = vset.pattern.permute.xlu0 %v534_v1  ;;  %v156_v3 = vld [vmem:[#allocation5 + $0xf8] sm:$0xff]  ;;  %v139_v6 = vld [vmem:[#allocation5 + $0x70] sm:$0xff]  ;;  %v535_v7 = vmov 13   ;;  %v536_v8 = vmov 5   ;;  %v154_v9 = vld [vmem:[#allocation5 + $0xe8] sm:$0xff]  ;;  %v537_v12 = vmov 0  }
  0x1c   :  { %v140_v4 = vld [vmem:[#allocation5 + $0x78] sm:$0xff]  ;;  %105 = vperm.xlu1 %448, %v572_v2   ;;  %63 = vperm.xlu0 %446, %v572_v2   ;;  %v138_v10 = vld [vmem:[#allocation5 + $0x68] sm:$0xff]  ;;  %v153_v11 = vld [vmem:[#allocation5 + $0xe0] sm:$0xff]  ;;  %v538_v13 = vmov 1   ;;  %v539_v21 = vmov 6   ;;  %v540_v22 = vmov 9  }
  0x1d   :  { %354 = vmatprep.subr.mxu0 %v156_v3  ;;  %v137_v14 = vld [vmem:[#allocation5 + $0x60] sm:$0xff]  ;;  %v152_v15 = vld [vmem:[#allocation5 + $0xd8] sm:$0xff]  ;;  %v187_v18 = vld [vmem:[#allocation5 + $0x1f0] sm:$0xff]  ;;  %v541_v29 = vmov 8   ;;  %v542_v30 = vmov 7   ;;  %v543_v37 = vmov 14  }
  0x1e   :  { %355 = vmatpush3.msra.mxu0 %v140_v4  ;;  %v188_v16 = vld [vmem:[#allocation5 + $0x1f8] sm:$0xff]  ;;  %v171_v20 = vld [vmem:[#allocation5 + $0x170] sm:$0xff]  ;;  %v186_v24 = vld [vmem:[#allocation5 + $0x1e8] sm:$0xff]  ;;  %v544_v38 = vmov 3   ;;  %v545_v47 = vmov 2   ;;  %v546_v56 = vmov 10  }
  0x1f   :  { %356 = vmatprep.subr.mxu0 %v155_v5  ;;  %389 = vmatprep.subr.mxu1 %v188_v16  ;;  %v172_v17 = vld [vmem:[#allocation5 + $0x178] sm:$0xff]  ;;  %v151_v23 = vld [vmem:[#allocation5 + $0xd0] sm:$0xff]  ;;  %v170_v26 = vld [vmem:[#allocation5 + $0x168] sm:$0xff]  ;;  %v547_v1 = vmov 15   ;;  %s550_s0 = smov [#allocation7]  }
  0x20   :  { %449 = vset.pattern.permute.xlu1 %v535_v7  ;;  %447 = vset.pattern.permute.xlu0 %v536_v8  ;;  %v136_v19 = vld [vmem:[#allocation5 + $0x58] sm:$0xff]  ;;  %v135_v25 = vld [vmem:[#allocation5 + $0x50] sm:$0xff]  ;;  %v150_v27 = vld [vmem:[#allocation5 + $0xc8] sm:$0xff]  ;;  %s336_s1 = sshll.u32 %s550_s0, 4  ;;  %s337_s1 = int_to_ptr.vmem [resolvable:$true] %s336_s1 }
  0x21   :  { %109 = vperm.xlu1 %449, %v572_v2   ;;  %67 = vperm.xlu0 %447, %v572_v2   ;;  %v185_v28 = vld [vmem:[#allocation5 + $0x1e0] sm:$0xff]  ;;  %v134_v31 = vld [vmem:[#allocation5 + $0x48] sm:$0xff]  ;;  %v184_v34 = vld [vmem:[#allocation5 + $0x1d8] sm:$0xff]  ;;  %s503_s21 = scalar_lea.vmem %s337_s1, 128  ;;  %p508_p11 = scmp.lt.s32.totalorder %s337_s1, %s337_s1 }
  0x22   :  { %357 = vmatpush3.msra.mxu0 %v139_v6  ;;  %390 = vmatpush3.msra.mxu1 %v172_v17  ;;  %v169_v32 = vld [vmem:[#allocation5 + $0x160] sm:$0xff]  ;;  %v168_v36 = vld [vmem:[#allocation5 + $0x158] sm:$0xff]  ;;  %v183_v40 = vld [vmem:[#allocation5 + $0x1d0] sm:$0xff]  ;;  %p504_p10 = scmp.ne.s32.totalorder %s337_s1, %s503_s21  ;;  %p509_p12 = scmp.lt.s32.totalorder %s503_s21, %s503_s21 }
  0x23   :  { %358 = vmatprep.subr.mxu0 %v154_v9  ;;  %391 = vmatprep.subr.mxu1 %v187_v18  ;;  %v149_v33 = vld [vmem:[#allocation5 + $0xc0] sm:$0xff]  ;;  %v148_v39 = vld [vmem:[#allocation5 + $0xb8] sm:$0xff]  ;;  %v167_v42 = vld [vmem:[#allocation5 + $0x150] sm:$0xff]  ;;  %v548_v9 = vmov 11  }
  0x24   :  { %359 = vmatpush3.msra.mxu0 %v138_v10  ;;  %392 = vmatpush3.msra.mxu1 %v171_v20  ;;  %v133_v35 = vld [vmem:[#allocation5 + $0x40] sm:$0xff]  ;;  %v132_v41 = vld [vmem:[#allocation5 + $0x38] sm:$0xff]  ;;  %v147_v43 = vld [vmem:[#allocation5 + $0xb0] sm:$0xff]  ;;  %p510_p13 = por %p509_p12, %p508_p11 }
  0x25   :  { %450 = vset.pattern.permute.xlu1 %v537_v12  ;;  %451 = vset.pattern.permute.xlu0 %v538_v13  ;;  %v131_v44 = vld [vmem:[#allocation5 + $0x30] sm:$0xff]  ;;  %v146_v45 = vld [vmem:[#allocation5 + $0xa8] sm:$0xff]  ;;  %v145_v50 = vld [vmem:[#allocation5 + $0xa0] sm:$0xff] }
  0x26   :  { %42 = vperm.xlu1 %450, %v572_v2   ;;  %46 = vperm.xlu0 %451, %v572_v2   ;;  %v182_v46 = vld [vmem:[#allocation5 + $0x1c8] sm:$0xff]  ;;  %v181_v51 = vld [vmem:[#allocation5 + $0x1c0] sm:$0xff]  ;;  %v144_v53 = vld [vmem:[#allocation5 + $0x98] sm:$0xff]  ;;  %p511_p0 = pnand %p510_p13, %p504_p10 }
  0x27   :  { %360 = vmatprep.subr.mxu0 %v153_v11  ;;  %393 = vmatprep.subr.mxu1 %v186_v24  ;;  %v130_v48 = vld [vmem:[#allocation5 + $0x28] sm:$0xff]  ;;  %v129_v52 = vld [vmem:[#allocation5 + $0x20] sm:$0xff]  ;;  %v128_v54 = vld [vmem:[#allocation5 + $0x18] sm:$0xff] }
  0x28   :  { %361 = vmatpush3.msra.mxu0 %v137_v14  ;;  %394 = vmatpush3.msra.mxu1 %v170_v26  ;;  %v166_v49 = vld [vmem:[#allocation5 + $0x148] sm:$0xff]  ;;  %v165_v55 = vld [vmem:[#allocation5 + $0x140] sm:$0xff]  ;;  %v143_v57 = vld [vmem:[#allocation5 + $0x90] sm:$0xff] }
  0x29   :  { %362 = vmatprep.subr.mxu0 %v152_v15  ;;  %395 = vmatprep.subr.mxu1 %v185_v28  ;;  %v180_v58 = vld [vmem:[#allocation5 + $0x1b8] sm:$0xff]  ;;  %v127_v59 = vld [vmem:[#allocation5 + $0x10] sm:$0xff]  ;;  %v142_v61 = vld [vmem:[#allocation5 + $0x88] sm:$0xff] }
  0x2a   :  { %452 = vset.pattern.permute.xlu1 %v539_v21  ;;  %454 = vset.pattern.permute.xlu0 %v540_v22  ;;  %v164_v60 = vld [vmem:[#allocation5 + $0x138] sm:$0xff]  ;;  %v126_v62 = vld [vmem:[#allocation5 + $0x8] sm:$0xff]  ;;  %v141_v63 = vld [vmem:[#allocation5 + $0x80] sm:$0xff]  ;;  %v39_v21 = vlaneseq }
  0x2b   :  { %72 = vperm.xlu1 %452, %v572_v2   ;;  %88 = vperm.xlu0 %454, %v572_v2   ;;  %v179_v0 = vld [vmem:[#allocation5 + $0x1b0] sm:$0xff]  ;;  %v125_v3 = vld [vmem:[#allocation5] sm:$0xff]  ;;  %v178_v5 = vld [vmem:[#allocation5 + $0x1a8] sm:$0xff] }
  0x2c   :  { %363 = vmatpush3.msra.mxu0 %v136_v19  ;;  %396 = vmatpush3.msra.mxu1 %v169_v32  ;;  %v163_v4 = vld [vmem:[#allocation5 + $0x130] sm:$0xff]  ;;  %v162_v6 = vld [vmem:[#allocation5 + $0x128] sm:$0xff]  ;;  %v177_v7 = vld [vmem:[#allocation5 + $0x1a0] sm:$0xff]  ;;  %v40_v24 = vand.u32 127, %v39_v21 }
  0x2d   :  { %364 = vmatprep.subr.mxu0 %v151_v23  ;;  %397 = vmatprep.subr.mxu1 %v184_v34  ;;  %v161_v8 = vld [vmem:[#allocation5 + $0x120] sm:$0xff]  ;;  %v176_v10 = vld [vmem:[#allocation5 + $0x198] sm:$0xff]  ;;  %v175_v12 = vld [vmem:[#allocation5 + $0x190] sm:$0xff] }
  0x2e   :  { %365 = vmatpush3.msra.mxu0 %v135_v25  ;;  %398 = vmatpush3.msra.mxu1 %v168_v36  ;;  %v160_v11 = vld [vmem:[#allocation5 + $0x118] sm:$0xff]  ;;  %v159_v13 = vld [vmem:[#allocation5 + $0x110] sm:$0xff]  ;;  %v174_v14 = vld [vmem:[#allocation5 + $0x188] sm:$0xff] }
  0x2f   :  { %453 = vset.pattern.permute.xlu1 %v541_v29  ;;  %457 = vset.pattern.permute.xlu0 %v542_v30  ;;  %v158_v15 = vld [vmem:[#allocation5 + $0x108] sm:$0xff]  ;;  %v173_v16 = vld [vmem:[#allocation5 + $0x180] sm:$0xff]  ;;  %v549_v29 = vmov 1.0  }
  0x30   :  { %84 = vperm.xlu1 %453, %v572_v2   ;;  %77 = vperm.xlu0 %457, %v572_v2   ;;  %v157_v17 = vld [vmem:[#allocation5 + $0x100] sm:$0xff] }
  0x31   :  { %366 = vmatprep.subr.mxu0 %v150_v27  ;;  %399 = vmatprep.subr.mxu1 %v183_v40 }
  0x32   :  { %367 = vmatpush3.msra.mxu0 %v134_v31  ;;  %400 = vmatpush3.msra.mxu1 %v167_v42 }
  0x33   :  { %368 = vmatprep.subr.mxu0 %v149_v33  ;;  %401 = vmatprep.subr.mxu1 %v182_v46 }
  0x34   :  { %455 = vset.pattern.permute.xlu1 %v543_v37  ;;  %460 = vset.pattern.permute.xlu0 %v544_v38 }
  0x35   :  { %114 = vperm.xlu1 %455, %v572_v2   ;;  %56 = vperm.xlu0 %460, %v572_v2  }
  0x36   :  { %369 = vmatpush3.msra.mxu0 %v133_v35  ;;  %402 = vmatpush3.msra.mxu1 %v166_v49 }
  0x37   :  { %370 = vmatprep.subr.mxu0 %v148_v39  ;;  %403 = vmatprep.subr.mxu1 %v181_v51 }
  0x38   :  { %371 = vmatpush3.msra.mxu0 %v132_v41  ;;  %404 = vmatpush3.msra.mxu1 %v165_v55 }
  0x39   :  { %456 = vset.pattern.permute.xlu1 %v545_v47  ;;  %372 = vmatprep.subr.mxu0 %v147_v43 }
  0x3a   :  { %51 = vperm.xlu1 %456, %v572_v2   ;;  %373 = vmatpush3.msra.mxu0 %v131_v44 }
  0x3b   :  { %374 = vmatprep.subr.mxu0 %v146_v45  ;;  %405 = vmatprep.subr.mxu1 %v180_v58 }
  0x3c   :  { %375 = vmatpush3.msra.mxu0 %v130_v48  ;;  %406 = vmatpush3.msra.mxu1 %v164_v60 }
  0x3d   :  { %376 = vmatprep.subr.mxu0 %v145_v50  ;;  %407 = vmatprep.subr.mxu1 %v179_v0 }
  0x3e   :  { %458 = vset.pattern.permute.xlu1 %v546_v56  ;;  %377 = vmatpush3.msra.mxu0 %v129_v52 }
  0x3f   :  { %93 = vperm.xlu1 %458, %v572_v2   ;;  %378 = vmatprep.subr.mxu0 %v144_v53 }
  0x40   :  { %379 = vmatpush3.msra.mxu0 %v128_v54  ;;  %408 = vmatpush3.msra.mxu1 %v163_v4 }
  0x41   :  { %380 = vmatprep.subr.mxu0 %v143_v57  ;;  %409 = vmatprep.subr.mxu1 %v178_v5 }
  0x42   :  { %381 = vmatpush3.msra.mxu0 %v127_v59  ;;  %462 = vset.pattern.permute.xlu0 %v547_v1 }
  0x43   :  { %459 = vset.pattern.permute.xlu1 %v547_v1  ;;  %382 = vmatprep.subr.mxu0 %v142_v61 }
  0x44   :  { %119 = vperm.xlu1 %459, %v572_v2   ;;  %383 = vmatpush3.msra.mxu0 %v126_v62 }
  0x45   :  { %384 = vmatprep.subr.mxu0 %v141_v63  ;;  %410 = vmatpush3.msra.mxu1 %v162_v6 }
  0x46   :  { %385 = vmatpush3.msra.mxu0 %v125_v3  ;;  %411 = vmatprep.subr.mxu1 %v177_v7 }
  0x47   :  { %412 = vmatpush3.msra.mxu1 %v161_v8 }
  0x48   :  { %461 = vset.pattern.permute.xlu1 %v548_v9  ;;  %413 = vmatprep.subr.mxu1 %v176_v10 }
  0x49   :  { %98 = vperm.xlu1 %461, %v572_v2   ;;  %414 = vmatpush3.msra.mxu1 %v160_v11 }
  0x4a   :  { %415 = vmatprep.subr.mxu1 %v175_v12 }
  0x4b   :  { %416 = vmatpush3.msra.mxu1 %v159_v13 }
  0x4c   :  { %417 = vmatprep.subr.mxu1 %v174_v14 }
  0x4d   :  { %418 = vmatpush3.msra.mxu1 %v158_v15 }
  0x4e   :  { %419 = vmatprep.subr.mxu1 %v173_v16 }
  0x4f   :  { %420 = vmatpush3.msra.mxu1 %v157_v17 }
  0x97   :  { %v106_v18 = vpop.permute.xlu1 %105  ;;  %v64_v19 = vpop.permute.xlu0 %63 }
  0x98   :  { %vm65_vm0 = vcmp.eq.s32.totalorder %v40_v24, %v64_v19 }
  0x9c   :  { %v110_v2 = vpop.permute.xlu1 %109  ;;  %v68_v20 = vpop.permute.xlu0 %67 }
  0x9d   :  { %vm69_vm1 = vcmp.eq.s32.totalorder %v40_v24, %v68_v20  ;;  %vm111_vm14 = vcmp.eq.s32.totalorder %v40_v24, %v110_v2 }
  0x9e   :  { %vm70_vm2 = vmor %vm65_vm0, %vm69_vm1  ;;  %vm107_vm0 = vcmp.eq.s32.totalorder %v40_v24, %v106_v18 }
  0x9f   :  { %vm112_vm1 = vmor %vm107_vm0, %vm111_vm14 }
  0xa1   :  { %v43_v22 = vpop.permute.xlu1 %42  ;;  %v47_v23 = vpop.permute.xlu0 %46 }
  0xa2   :  { %vm44_vm7 = vcmp.eq.s32.totalorder %v40_v24, %v43_v22  ;;  %vm48_vm8 = vcmp.eq.s32.totalorder %v40_v24, %v47_v23 }
  0xa3   :  { %vm49_vm10 = vmor %vm44_vm7, %vm48_vm8 }
  0xa6   :  { %v73_v25 = vpop.permute.xlu1 %72  ;;  %v89_v26 = vpop.permute.xlu0 %88 }
  0xa7   :  { %vm74_vm3 = vcmp.eq.s32.totalorder %v40_v24, %v73_v25 }
  0xa8   :  { %vm75_vm5 = vmor %vm70_vm2, %vm74_vm3 }
  0xab   :  { %v85_v27 = vpop.permute.xlu1 %84  ;;  %v78_v28 = vpop.permute.xlu0 %77 }
  0xac   :  { %vm79_vm4 = vcmp.eq.s32.totalorder %v40_v24, %v78_v28 }
  0xad   :  { %vm80_vm6 = vmor %vm75_vm5, %vm79_vm4  ;;  %vm90_vm4 = vcmp.eq.s32.totalorder %v40_v24, %v89_v26  ;;  %vm86_vm5 = vcmp.eq.s32.totalorder %v40_v24, %v85_v27 }
  0xae   :  { %350 = vmatprep.mubr.msk.f32.mxu0 %vm80_vm6, %v549_v29  ;;  %vm91_vm8 = vmor %vm86_vm5, %vm90_vm4 }
  0xb0   :  { %v115_v30 = vpop.permute.xlu1 %114  ;;  %v57_v31 = vpop.permute.xlu0 %56 }
  0xb1   :  { %vm58_vm9 = vcmp.eq.s32.totalorder %v40_v24, %v57_v31  ;;  %vm116_vm15 = vcmp.eq.s32.totalorder %v40_v24, %v115_v30 }
  0xb2   :  { %vm117_vm3 = vmor %vm112_vm1, %vm116_vm15 }
  0xb5   :  { %v52_v32 = vpop.permute.xlu1 %51 }
  0xb6   :  { %vm53_vm11 = vcmp.eq.s32.totalorder %v40_v24, %v52_v32 }
  0xb7   :  { %vm54_vm12 = vmor %vm49_vm10, %vm53_vm11 }
  0xb8   :  { %vm59_vm13 = vmor %vm54_vm12, %vm58_vm9 }
  0xb9   :  { %351 = vmatmul.mubr.msk.f32.vlgmr.msra.gmra.mxu0 %vm59_vm13, %v549_v29 }
  0xba   :  { %v94_v33 = vpop.permute.xlu1 %93 }
  0xbb   :  { %vm95_vm7 = vcmp.eq.s32.totalorder %v40_v24, %v94_v33 }
  0xbc   :  { %vm96_vm10 = vmor %vm91_vm8, %vm95_vm7 }
  0xbf   :  { %v120_v34 = vpop.permute.xlu1 %119 }
  0xc0   :  { %vm121_vm2 = vcmp.eq.s32.totalorder %v40_v24, %v120_v34 }
  0xc1   :  { %vm122_vm6 = vmor %vm117_vm3, %vm121_vm2 }
  0xc2   :  { %352 = vmatprep.mubr.msk.f32.mxu1 %vm122_vm6, %v549_v29 }
  0xc4   :  { %v99_v35 = vpop.permute.xlu1 %98 }
  0xc5   :  { %vm100_vm11 = vcmp.eq.s32.totalorder %v40_v24, %v99_v35 }
  0xc6   :  { %vm101_vm9 = vmor %vm96_vm10, %vm100_vm11 }
  0xc7   :  { %353 = vmatmul.mubr.msk.f32.vlgmr.msra.gmra.mxu1 %vm101_vm9, %v549_v29 }
 0x179   :  { %v386_v36 = vpop.f32.mrf.mxu0 }
 0x17b   :  { %v387_v37 = vpop.f32.mrf.mxu0 }
 0x17c   :  { %v388_v40 = vadd.f32 %v387_v37, %v386_v36 }
 0x187   :  { %v421_v38 = vpop.f32.mrf.mxu1 }
 0x189   :  { %v422_v39 = vpop.f32.mrf.mxu1 }
 0x18a   :  { %v423_v41 = vadd.f32 %v422_v39, %v421_v38 }
 0x18c   :  { %v326_v42 = vadd.f32 %v423_v41, %v388_v40 }
 0x18e   :  { %329 = vst [vmem:[#allocation7] sm:$0xff] %v326_v42 }
 0x18f   :  { %514 = shalt.err (!%p511_p0)
}
 0x190   :  { %339 = dma.vmem_to_hbm [thread:$0]  %s337_s1, 128, %s595_s2, [#allocation4]  }
 0x191   :  { %527 = dma.done.wait [#allocation4], 128  }
 0x192   :  { %528 = vsyncadd [#allocation4], 4294967168 }
 0x193   :  { %343 = vsyncpa [#allocation3], 1 }
 0x194   :  { %344 = vsyncpa [#allocation6], 1 }
 0x195   :  { %345 = vsyncpa [#allocation4], 1 }

</bundles_post_ra>
